<compile_context>
chip_gen: v7x
topology: tpu7x:2x2x1
jax: 0.10.0
libtpu: 0.0.40
codegen_flags: <defaults>
</compile_context>

<pallas_src>
import jax
import jax.numpy as jnp
from jax.experimental import pallas as pl
from jax.experimental.pallas import tpu as pltpu


def decoder_gaussian_kernel(z_ref, w1_ref, b1_ref, wh_ref, bh_ref, mu_ref, var_ref):
    """One batch tile: h = tanh(z@W1+b1); [mu|log_var] = h@[Wmu|Wlv]+[bmu|blv]."""
    d = mu_ref.shape[-1]
    # Hidden layer: (tb, L) @ (L, H) -> (tb, H); f32 accumulate, tanh in f32.
    h = jnp.tanh(
        jnp.dot(z_ref[...], w1_ref[...], preferred_element_type=jnp.float32)
        + b1_ref[...]
    )
    # Fused heads (f32 operands): (tb, H) @ (H, 2D) -> (tb, 2D).
    heads = (
        jnp.dot(h.astype(wh_ref.dtype), wh_ref[...],
                preferred_element_type=jnp.float32)
        + bh_ref[...]
    )
    # Direct lane-aligned stores of each half; exp only on the log_var half.
    mu_ref[...] = heads[:, :d].astype(mu_ref.dtype)
    var_ref[...] = jnp.exp(heads[:, d:]).astype(var_ref.dtype)


def _vmem_cap_bytes():
    """~75% of the chip's VMEM (v7x has only 64 MiB per TensorCore)."""
    try:
        info = pltpu.get_tpu_info()
        return int(info.vmem_capacity_bytes * 3 // 4)
    except Exception:
        return 48 << 20


def _kernel_vmem_bytes(tile_b, L, H, D, in_bytes, out_bytes, weight_bufs=2):
    """Rough VMEM footprint (streamed blocks double-buffered by Pallas)."""
    two_d = 2 * D
    weights = weight_bufs * ((L * H) * in_bytes + (H * two_d) * 4
                             + H * 4 + two_d * 4)
    streamed_in = 2 * tile_b * L * in_bytes
    streamed_out = 2 * 2 * tile_b * D * out_bytes     # two outputs, double-buffered
    live = tile_b * (H + two_d) * 4                   # h + heads intermediates
    return weights + streamed_in + streamed_out + live


def _choose_tile_b(B, L, H, D, in_bytes, out_bytes, vmem_budget, max_tile=2048):
    """Largest valid batch tile fitting VMEM; prefer even (>=2) grid steps."""
    align = 16 if in_bytes < 4 else 8   # bf16 packs 16 rows / sublane group
    top = min(B, max_tile)
    cands = [t for t in range(top - top % align, 0, -align) if B % t == 0]
    if B <= max_tile and B not in cands:
        cands.insert(0, B)              # full-batch block is always legal
    if not cands:
        cands = [B]
    fits = [t for t in cands
            if _kernel_vmem_bytes(t, L, H, D, in_bytes, out_bytes) <= vmem_budget]
    if not fits:
        fits = [min(cands)]
    # Even (>=2) step count lets the "parallel" batch axis split across the
    # 2 TensorCores on v7x; costs ~0.35us/step on single-TC v5e/v6e.
    even = [t for t in fits if (B // t) >= 2 and (B // t) % 2 == 0]
    pool = even or fits
    return max(pool)


def decoder_gaussian_forward(z, params, *, tile_b=None, mxu_dtype=jnp.bfloat16,
                             out_dtype=jnp.float32):
    """Returns (mu, var) exactly like DecoderGaussian.forward."""
    w1, b1, wmu, bmu, wlv, blv = params
    B, L = z.shape
    H = w1.shape[1]
    D = wmu.shape[1]
    two_d = 2 * D

    # Fuse the two heads into one (H, 2D) weight / (1, 2D) bias. Heads stay in
    # f32 so exp(log_var) does not amplify bf16 rounding error.
    w_heads = jnp.concatenate([wmu, wlv], axis=1).astype(jnp.float32)
    b_heads = jnp.concatenate(
        [bmu.reshape(1, D), blv.reshape(1, D)], axis=1).astype(jnp.float32)

    z_m = z.astype(mxu_dtype)
    w1_m = w1.astype(mxu_dtype)
    b1_f = b1.astype(jnp.float32).reshape(1, H)

    in_bytes = jnp.dtype(mxu_dtype).itemsize
    out_bytes = jnp.dtype(out_dtype).itemsize

    vmem_cap = _vmem_cap_bytes()
    if tile_b is None:
        tile_b = _choose_tile_b(B, L, H, D, in_bytes, out_bytes,
                                vmem_budget=vmem_cap - (8 << 20))
    assert B % tile_b == 0, (B, tile_b)
    grid = (B // tile_b,)

    vmem_need = _kernel_vmem_bytes(tile_b, L, H, D, in_bytes, out_bytes)
    vmem_limit = int(min(max(vmem_need + (4 << 20), 32 << 20), vmem_cap))

    cost = pl.CostEstimate(
        flops=2 * B * (L * H + H * two_d),
        transcendentals=B * (H + D),                   # tanh(H) + exp(D) per row
        bytes_accessed=(B * L * in_bytes
                        + L * H * in_bytes + H * two_d * 4
                        + (H + two_d) * 4
                        + 2 * B * D * out_bytes),
    )

    out_shape = (jax.ShapeDtypeStruct((B, D), out_dtype),
                 jax.ShapeDtypeStruct((B, D), out_dtype))
    out_specs = (pl.BlockSpec((tile_b, D), lambda i: (i, 0)),
                 pl.BlockSpec((tile_b, D), lambda i: (i, 0)))

    def _run(single_buffer_weights):
        wkw = dict(pipeline_mode=pl.Buffered(1)) if single_buffer_weights else {}
        in_specs = [
            pl.BlockSpec((tile_b, L), lambda i: (i, 0)),          # z: batch-tiled
            pl.BlockSpec((L, H), lambda i: (0, 0), **wkw),        # W1: resident
            pl.BlockSpec((1, H), lambda i: (0, 0), **wkw),        # b1
            pl.BlockSpec((H, two_d), lambda i: (0, 0), **wkw),    # [Wmu | Wlv]
            pl.BlockSpec((1, two_d), lambda i: (0, 0), **wkw),    # [bmu | blv]
        ]
        return pl.pallas_call(
            decoder_gaussian_kernel,
            out_shape=out_shape,
            grid=grid,
            in_specs=in_specs,
            out_specs=out_specs,
            compiler_params=pltpu.CompilerParams(
                dimension_semantics=("parallel",),
                vmem_limit_bytes=vmem_limit,
            ),
            cost_estimate=cost,
        )(z_m, w1_m, b1_f, w_heads, b_heads)

    try:
        mu, var = _run(True)     # single-buffer the grid-invariant weight blocks
    except Exception:
        mu, var = _run(False)    # fall back to default buffering
    return mu, var


def decoder_gaussian_ref(z, params):
    """Pure-JAX reference of DecoderGaussian.forward."""
    w1, b1, wmu, bmu, wlv, blv = params
    h = jnp.tanh(z @ w1 + b1)
    mu = h @ wmu + bmu
    log_var = h @ wlv + blv
    var = jnp.exp(log_var)
    # TODO(synk): torch.distributions.MultivariateNormal construction (diag_embed
    # covariance) has no tensor output in forward; sampling/log_prob not needed here.
    return mu, var


def init_params(key, latent, hidden, out_dim):
    # TODO(synk): if hidden/latent grow, zero-pad them to multiples of 128 so the
    # head matmul K dim better fills the MXU (irrelevant at these HBM-bound sizes).
    k1, k2, k3 = jax.random.split(key, 3)
    w1 = jax.random.normal(k1, (latent, hidden), jnp.float32) * 0.1
    b1 = jnp.zeros((1, hidden), jnp.float32)
    wmu = jax.random.normal(k2, (hidden, out_dim), jnp.float32) * 0.1
    bmu = jnp.zeros((1, out_dim), jnp.float32)
    wlv = jax.random.normal(k3, (hidden, out_dim), jnp.float32) * 0.1
    blv = jnp.full((1, out_dim), -1.0, jnp.float32)
    return (w1, b1, wmu, bmu, wlv, blv)


if __name__ == "__main__":
    key = jax.random.PRNGKey(0)
    kz, kp = jax.random.split(key)

    B, LATENT, HIDDEN, OUT = 16, 32, 64, 128
    z = jax.random.normal(kz, (B, LATENT), jnp.float32)
    params = init_params(kp, LATENT, HIDDEN, OUT)

    mu_ref, var_ref = decoder_gaussian_ref(z, params)

    # Default path: bf16 MXU operands on layer 1, f32 heads / tanh / exp / bias.
    mu, var = decoder_gaussian_forward(z, params)
    jax.block_until_ready((mu, var))
    assert mu.shape == (B, OUT) and var.shape == (B, OUT)
    assert mu.dtype == jnp.float32 and var.dtype == jnp.float32
    assert jnp.allclose(mu, mu_ref, atol=3e-2, rtol=3e-2)
    assert jnp.allclose(var, var_ref, atol=3e-2, rtol=3e-2)
    assert bool(jnp.all(var > 0))

    # Full-f32 path matches the reference tightly.
    mu32, var32 = decoder_gaussian_forward(z, params, mxu_dtype=jnp.float32)
    jax.block_until_ready((mu32, var32))
    assert jnp.allclose(mu32, mu_ref, atol=1e-5, rtol=1e-5)
    assert jnp.allclose(var32, var_ref, atol=1e-5, rtol=1e-5)

    print("KERNEL_OK")
</pallas_src>

<mosaic_0001>
module attributes {stable_mosaic.version = 11 : i64} {
  func.func @decoder_gaussian_kernel(%arg0: i32, %arg1: memref<16x32xbf16, #tpu.memory_space<vmem>>, %arg2: memref<32x64xbf16, #tpu.memory_space<vmem>>, %arg3: memref<1x64xf32, #tpu.memory_space<vmem>>, %arg4: memref<64x256xf32, #tpu.memory_space<vmem>>, %arg5: memref<1x256xf32, #tpu.memory_space<vmem>>, %arg6: memref<16x128xf32, #tpu.memory_space<vmem>>, %arg7: memref<16x128xf32, #tpu.memory_space<vmem>>) attributes {dimension_semantics = [#tpu.dimension_semantics<parallel>], iteration_bounds = array<i64: 1>, scalar_prefetch = 0 : i64, scratch_operands = 0 : i64, tpu.core_type = #tpu.core_type<tc>, window_params = [{transform_indices = @transform_0, window_bounds = array<i64: 16, 32>}, {pipeline_mode = #tpu.pipeline_mode<synchronous>, transform_indices = @transform_1, window_bounds = array<i64: 32, 64>}, {pipeline_mode = #tpu.pipeline_mode<synchronous>, transform_indices = @transform_2, window_bounds = array<i64: 1, 64>}, {pipeline_mode = #tpu.pipeline_mode<synchronous>, transform_indices = @transform_3, window_bounds = array<i64: 64, 256>}, {pipeline_mode = #tpu.pipeline_mode<synchronous>, transform_indices = @transform_4, window_bounds = array<i64: 1, 256>}, {transform_indices = @transform_5, window_bounds = array<i64: 16, 128>}, {transform_indices = @transform_6, window_bounds = array<i64: 16, 128>}]} {
    %c0 = arith.constant 0 : index
    %c0_0 = arith.constant 0 : index
    %0 = vector.load %arg1[%c0, %c0_0] : memref<16x32xbf16, #tpu.memory_space<vmem>>, vector<16x32xbf16>
    %c0_1 = arith.constant 0 : index
    %c0_2 = arith.constant 0 : index
    %1 = vector.load %arg2[%c0_1, %c0_2] : memref<32x64xbf16, #tpu.memory_space<vmem>>, vector<32x64xbf16>
    %cst = arith.constant dense<0.000000e+00> : vector<16x64xf32>
    %2 = tpu.matmul %0, %1, %cst {dimension_numbers = #tpu.dot_dimension_numbers<[1], [0], [0], [1], [0, 0, 1, 1], [], []>} : vector<16x32xbf16>, vector<32x64xbf16>, vector<16x64xf32> -> vector<16x64xf32>
    %c0_3 = arith.constant 0 : index
    %c0_4 = arith.constant 0 : index
    %3 = vector.load %arg3[%c0_3, %c0_4] : memref<1x64xf32, #tpu.memory_space<vmem>>, vector<1x64xf32>
    %4 = vector.broadcast %3 : vector<1x64xf32> to vector<16x64xf32>
    %5 = arith.addf %2, %4 : vector<16x64xf32>
    %6 = math.tanh %5 : vector<16x64xf32>
    %c0_5 = arith.constant 0 : index
    %c0_6 = arith.constant 0 : index
    %7 = vector.load %arg4[%c0_5, %c0_6] : memref<64x256xf32, #tpu.memory_space<vmem>>, vector<64x256xf32>
    %cst_7 = arith.constant dense<0.000000e+00> : vector<16x256xf32>
    %8 = tpu.matmul %6, %7, %cst_7 {dimension_numbers = #tpu.dot_dimension_numbers<[1], [0], [0], [1], [0, 0, 1, 1], [], []>} : vector<16x64xf32>, vector<64x256xf32>, vector<16x256xf32> -> vector<16x256xf32>
    %c0_8 = arith.constant 0 : index
    %c0_9 = arith.constant 0 : index
    %9 = vector.load %arg5[%c0_8, %c0_9] : memref<1x256xf32, #tpu.memory_space<vmem>>, vector<1x256xf32>
    %10 = vector.broadcast %9 : vector<1x256xf32> to vector<16x256xf32>
    %11 = arith.addf %8, %10 : vector<16x256xf32>
    %12 = vector.extract_strided_slice %11 {offsets = [0, 0], sizes = [16, 128], strides = [1, 1]} : vector<16x256xf32> to vector<16x128xf32>
    %c0_10 = arith.constant 0 : index
    %c0_11 = arith.constant 0 : index
    %13 = vector.load %arg6[%c0_10, %c0_11] : memref<16x128xf32, #tpu.memory_space<vmem>>, vector<16x128xf32>
    tpu.vector_store %arg6[%c0_10, %c0_11], %12 {strides = array<i32>} : memref<16x128xf32, #tpu.memory_space<vmem>>, vector<16x128xf32>,
    %14 = vector.extract_strided_slice %11 {offsets = [0, 128], sizes = [16, 128], strides = [1, 1]} : vector<16x256xf32> to vector<16x128xf32>
    %15 = math.exp %14 : vector<16x128xf32>
    %c0_12 = arith.constant 0 : index
    %c0_13 = arith.constant 0 : index
    %16 = vector.load %arg7[%c0_12, %c0_13] : memref<16x128xf32, #tpu.memory_space<vmem>>, vector<16x128xf32>
    tpu.vector_store %arg7[%c0_12, %c0_13], %15 {strides = array<i32>} : memref<16x128xf32, #tpu.memory_space<vmem>>, vector<16x128xf32>,
    return
  }
  func.func @transform_0(%arg0: i32) -> (i32, i32) {
    %c0_i32 = arith.constant 0 : i32
    %c0_i32_0 = arith.constant 0 : i32
    return %arg0, %c0_i32 : i32, i32
  }
  func.func @transform_1(%arg0: i32) -> (i32, i32) {
    %c0_i32 = arith.constant 0 : i32
    %c0_i32_0 = arith.constant 0 : i32
    %c0_i32_1 = arith.constant 0 : i32
    return %c0_i32, %c0_i32_0 : i32, i32
  }
  func.func @transform_2(%arg0: i32) -> (i32, i32) {
    %c0_i32 = arith.constant 0 : i32
    %c0_i32_0 = arith.constant 0 : i32
    %c0_i32_1 = arith.constant 0 : i32
    return %c0_i32, %c0_i32_0 : i32, i32
  }
  func.func @transform_3(%arg0: i32) -> (i32, i32) {
    %c0_i32 = arith.constant 0 : i32
    %c0_i32_0 = arith.constant 0 : i32
    %c0_i32_1 = arith.constant 0 : i32
    return %c0_i32, %c0_i32_0 : i32, i32
  }
  func.func @transform_4(%arg0: i32) -> (i32, i32) {
    %c0_i32 = arith.constant 0 : i32
    %c0_i32_0 = arith.constant 0 : i32
    %c0_i32_1 = arith.constant 0 : i32
    return %c0_i32, %c0_i32_0 : i32, i32
  }
  func.func @transform_5(%arg0: i32) -> (i32, i32) {
    %c0_i32 = arith.constant 0 : i32
    %c0_i32_0 = arith.constant 0 : i32
    return %arg0, %c0_i32 : i32, i32
  }
  func.func @transform_6(%arg0: i32) -> (i32, i32) {
    %c0_i32 = arith.constant 0 : i32
    %c0_i32_0 = arith.constant 0 : i32
    return %arg0, %c0_i32 : i32, i32
  }
}

module attributes {stable_mosaic.version = 11 : i64} {
  func.func @decoder_gaussian_kernel(%arg0: i32, %arg1: memref<16x32xbf16, #tpu.memory_space<vmem>>, %arg2: memref<32x64xbf16, #tpu.memory_space<vmem>>, %arg3: memref<1x64xf32, #tpu.memory_space<vmem>>, %arg4: memref<64x256xf32, #tpu.memory_space<vmem>>, %arg5: memref<1x256xf32, #tpu.memory_space<vmem>>, %arg6: memref<16x128xf32, #tpu.memory_space<vmem>>, %arg7: memref<16x128xf32, #tpu.memory_space<vmem>>) attributes {dimension_semantics = [#tpu.dimension_semantics<parallel>], iteration_bounds = array<i64: 1>, scalar_prefetch = 0 : i64, scratch_operands = 0 : i64, tpu.core_type = #tpu.core_type<tc>, window_params = [{transform_indices = @transform_0, window_bounds = array<i64: 16, 32>}, {pipeline_mode = #tpu.pipeline_mode<synchronous>, transform_indices = @transform_1, window_bounds = array<i64: 32, 64>}, {pipeline_mode = #tpu.pipeline_mode<synchronous>, transform_indices = @transform_2, window_bounds = array<i64: 1, 64>}, {pipeline_mode = #tpu.pipeline_mode<synchronous>, transform_indices = @transform_3, window_bounds = array<i64: 64, 256>}, {pipeline_mode = #tpu.pipeline_mode<synchronous>, transform_indices = @transform_4, window_bounds = array<i64: 1, 256>}, {transform_indices = @transform_5, window_bounds = array<i64: 16, 128>}, {transform_indices = @transform_6, window_bounds = array<i64: 16, 128>}]} {
    %c0 = arith.constant 0 : index
    %c0_0 = arith.constant 0 : index
    %0 = vector.load %arg1[%c0, %c0_0] : memref<16x32xbf16, #tpu.memory_space<vmem>>, vector<16x32xbf16>
    %c0_1 = arith.constant 0 : index
    %c0_2 = arith.constant 0 : index
    %1 = vector.load %arg2[%c0_1, %c0_2] : memref<32x64xbf16, #tpu.memory_space<vmem>>, vector<32x64xbf16>
    %cst = arith.constant dense<0.000000e+00> : vector<16x64xf32>
    %2 = tpu.matmul %0, %1, %cst {dimension_numbers = #tpu.dot_dimension_numbers<[1], [0], [0], [1], [0, 0, 1, 1], [], []>} : vector<16x32xbf16>, vector<32x64xbf16>, vector<16x64xf32> -> vector<16x64xf32>
    %c0_3 = arith.constant 0 : index
    %c0_4 = arith.constant 0 : index
    %3 = vector.load %arg3[%c0_3, %c0_4] : memref<1x64xf32, #tpu.memory_space<vmem>>, vector<1x64xf32>
    %4 = vector.broadcast %3 : vector<1x64xf32> to vector<16x64xf32>
    %5 = arith.addf %2, %4 : vector<16x64xf32>
    %6 = math.tanh %5 : vector<16x64xf32>
    %c0_5 = arith.constant 0 : index
    %c0_6 = arith.constant 0 : index
    %7 = vector.load %arg4[%c0_5, %c0_6] : memref<64x256xf32, #tpu.memory_space<vmem>>, vector<64x256xf32>
    %cst_7 = arith.constant dense<0.000000e+00> : vector<16x256xf32>
    %8 = tpu.matmul %6, %7, %cst_7 {dimension_numbers = #tpu.dot_dimension_numbers<[1], [0], [0], [1], [0, 0, 1, 1], [], []>} : vector<16x64xf32>, vector<64x256xf32>, vector<16x256xf32> -> vector<16x256xf32>
    %c0_8 = arith.constant 0 : index
    %c0_9 = arith.constant 0 : index
    %9 = vector.load %arg5[%c0_8, %c0_9] : memref<1x256xf32, #tpu.memory_space<vmem>>, vector<1x256xf32>
    %10 = vector.broadcast %9 : vector<1x256xf32> to vector<16x256xf32>
    %11 = arith.addf %8, %10 : vector<16x256xf32>
    %12 = vector.extract_strided_slice %11 {offsets = [0, 0], sizes = [16, 128], strides = [1, 1]} : vector<16x256xf32> to vector<16x128xf32>
    %c0_10 = arith.constant 0 : index
    %c0_11 = arith.constant 0 : index
    %13 = vector.load %arg6[%c0_10, %c0_11] : memref<16x128xf32, #tpu.memory_space<vmem>>, vector<16x128xf32>
    tpu.vector_store %arg6[%c0_10, %c0_11], %12 {strides = array<i32>} : memref<16x128xf32, #tpu.memory_space<vmem>>, vector<16x128xf32>,
    %14 = vector.extract_strided_slice %11 {offsets = [0, 128], sizes = [16, 128], strides = [1, 1]} : vector<16x256xf32> to vector<16x128xf32>
    %15 = math.exp %14 : vector<16x128xf32>
    %c0_12 = arith.constant 0 : index
    %c0_13 = arith.constant 0 : index
    %16 = vector.load %arg7[%c0_12, %c0_13] : memref<16x128xf32, #tpu.memory_space<vmem>>, vector<16x128xf32>
    tpu.vector_store %arg7[%c0_12, %c0_13], %15 {strides = array<i32>} : memref<16x128xf32, #tpu.memory_space<vmem>>, vector<16x128xf32>,
    return
  }
  func.func @transform_0(%arg0: i32) -> (i32, i32) {
    %c0_i32 = arith.constant 0 : i32
    %c0_i32_0 = arith.constant 0 : i32
    return %arg0, %c0_i32 : i32, i32
  }
  func.func @transform_1(%arg0: i32) -> (i32, i32) {
    %c0_i32 = arith.constant 0 : i32
    %c0_i32_0 = arith.constant 0 : i32
    %c0_i32_1 = arith.constant 0 : i32
    return %c0_i32, %c0_i32_0 : i32, i32
  }
  func.func @transform_2(%arg0: i32) -> (i32, i32) {
    %c0_i32 = arith.constant 0 : i32
    %c0_i32_0 = arith.constant 0 : i32
    %c0_i32_1 = arith.constant 0 : i32
    return %c0_i32, %c0_i32_0 : i32, i32
  }
  func.func @transform_3(%arg0: i32) -> (i32, i32) {
    %c0_i32 = arith.constant 0 : i32
    %c0_i32_0 = arith.constant 0 : i32
    %c0_i32_1 = arith.constant 0 : i32
    return %c0_i32, %c0_i32_0 : i32, i32
  }
  func.func @transform_4(%arg0: i32) -> (i32, i32) {
    %c0_i32 = arith.constant 0 : i32
    %c0_i32_0 = arith.constant 0 : i32
    %c0_i32_1 = arith.constant 0 : i32
    return %c0_i32, %c0_i32_0 : i32, i32
  }
  func.func @transform_5(%arg0: i32) -> (i32, i32) {
    %c0_i32 = arith.constant 0 : i32
    %c0_i32_0 = arith.constant 0 : i32
    return %arg0, %c0_i32 : i32, i32
  }
  func.func @transform_6(%arg0: i32) -> (i32, i32) {
    %c0_i32 = arith.constant 0 : i32
    %c0_i32_0 = arith.constant 0 : i32
    return %arg0, %c0_i32 : i32, i32
  }
}

</mosaic_0001>

<bundles_post_ra>
// kernel: tpu_custom_call.1
= control target key start
LH: loop header
LB: loop body
LE: loop exit
PB: predicated region body
PF: predicated region fallthrough
CT: control target
= control target key end

     0   :  { %12 = vsyncpa [#allocation3], 0  ;;  %s594_s0 = inlined_call_operand.hbm [shape: bf16[16,32], index: 0, kind: input, shape index: {}]   ;;  %s595_s1 = inlined_call_operand.hbm [shape: bf16[32,64], index: 1, kind: input, shape index: {}]   ;;  %s596_s2 = inlined_call_operand.vmem [shape: f32[1,64], index: 2, kind: input, shape index: {}]   ;;  %s597_s3 = inlined_call_operand.hbm [shape: f32[64,256], index: 3, kind: input, shape index: {}]   ;;  %s598_s4 = inlined_call_operand.vmem [shape: f32[1,256], index: 4, kind: input, shape index: {}]   ;;  %s599_s5 = inlined_call_operand.hbm [shape: f32[16,128], index: 5, kind: output, shape index: {0}]   ;;  %s600_s6 = inlined_call_operand.hbm [shape: f32[16,128], index: 6, kind: output, shape index: {1}]  }
   0x1   :  { %13 = vsyncpa [#allocation6], 0 }
   0x2   :  { %14 = vsyncpa [#allocation4], 0 }
   0x3   :  { %15 = vsyncpa [#allocation10], 0  ;;  %s473_s21 = smov [#allocation5]   ;;  %s474_s23 = smov [#allocation2]  }
   0x4   :  { %s33_s22 = sshll.u32 %s473_s21, 4  ;;  %s21_s24 = sshll.u32 %s474_s23, 4  ;;  %s34_s22 = int_to_ptr.vmem [resolvable:$true] %s33_s22  ;;  %s521_s24 = int_to_ptr.vmem [resolvable:$true] %s21_s24 }
   0x5   :  { %s355_s27 = scalar_lea.hbm %s595_s1, 256 }
   0x6   :  { %p356_p0 = scmp.ne.s32.totalorder %s595_s1, %s355_s27  ;;  %p359_p1 = scmp.lt.u32.totalorder %s355_s27, %s595_s1 }
   0x8   :  { %p361_p2 = pnand %p359_p1, %p356_p0 }
   0xa   :  { %364 = shalt.err (!%p361_p2)
}
   0xb   :  { %s365_s8 = scalar_lea.vmem %s34_s22, 256  ;;  %p370_p4 = scmp.lt.s32.totalorder %s34_s22, %s34_s22 }
   0xc   :  { %p366_p3 = scmp.ne.s32.totalorder %s34_s22, %s365_s8  ;;  %p371_p5 = scmp.lt.s32.totalorder %s365_s8, %s365_s8 }
   0xe   :  { %p372_p6 = por %p371_p5, %p370_p4 }
  0x10   :  { %p373_p7 = pnand %p372_p6, %p366_p3 }
  0x12   :  { %376 = shalt.err (!%p373_p7)
}
  0x13   :  { %s475_s9 = smov 64   ;;  %s476_s10 = smov 4  }
  0x14   :  { %39 = dma.hbm_to_vmem [thread:$0]  %s595_s1, 256, %s34_s22, [#allocation6], %s475_s9, %s475_s9, %s476_s10  }
  0x15   :  { %s377_s15 = scalar_lea.hbm %s594_s0, 128 }
  0x16   :  { %p378_p8 = scmp.ne.s32.totalorder %s594_s0, %s377_s15  ;;  %p381_p9 = scmp.lt.u32.totalorder %s377_s15, %s594_s0 }
  0x18   :  { %p383_p10 = pnand %p381_p9, %p378_p8 }
  0x1a   :  { %386 = shalt.err (!%p383_p10)
}
  0x1b   :  { %s387_s20 = scalar_lea.vmem %s521_s24, 128  ;;  %p392_p12 = scmp.lt.s32.totalorder %s521_s24, %s521_s24 }
  0x1c   :  { %p388_p11 = scmp.ne.s32.totalorder %s521_s24, %s387_s20  ;;  %p393_p13 = scmp.lt.s32.totalorder %s387_s20, %s387_s20 }
  0x1e   :  { %p394_p0 = por %p393_p13, %p392_p12 }
  0x20   :  { %p395_p1 = pnand %p394_p0, %p388_p11 }
  0x22   :  { %398 = shalt.err (!%p395_p1)
}
  0x23   :  { %27 = dma.hbm_to_vmem [thread:$0]  %s594_s0, 128, %s521_s24, [#allocation3], %s475_s9, %s475_s9, %s476_s10  }
  0x24   :  { %s477_s22 = smov [#allocation7]   ;;  %s399_s27 = scalar_lea.hbm %s597_s3, 2048 }
  0x25   :  { %s47_s23 = sshll.u32 %s477_s22, 4  ;;  %p400_p2 = scmp.ne.s32.totalorder %s597_s3, %s399_s27  ;;  %s48_s23 = int_to_ptr.vmem [resolvable:$true] %s47_s23 }
  0x26   :  { %p403_p3 = scmp.lt.u32.totalorder %s399_s27, %s597_s3 }
  0x28   :  { %p405_p4 = pnand %p403_p3, %p400_p2 }
  0x2a   :  { %408 = shalt.err (!%p405_p4)
}
  0x2b   :  { %s409_s8 = scalar_lea.vmem %s48_s23, 2048  ;;  %p414_p6 = scmp.lt.s32.totalorder %s48_s23, %s48_s23 }
  0x2c   :  { %p410_p5 = scmp.ne.s32.totalorder %s48_s23, %s409_s8  ;;  %p415_p7 = scmp.lt.s32.totalorder %s409_s8, %s409_s8 }
  0x2e   :  { %p416_p8 = por %p415_p7, %p414_p6 }
  0x30   :  { %p417_p9 = pnand %p416_p8, %p410_p5 }
  0x32   :  { %420 = shalt.err (!%p417_p9)
}
  0x33   :  { %s478_s0 = smov 256   ;;  %s479_s24 = smov 16  }
  0x34   :  { %53 = dma.hbm_to_vmem [thread:$0]  %s597_s3, 2048, %s48_s23, [#allocation6], %s478_s0, %s478_s0, %s479_s24  }
  0x35   :  { %465 = dma.done.wait [#allocation3], 128  }
  0x36   :  { %466 = vsyncadd [#allocation3], 4294967168 }
  0x37   :  { %467 = dma.done.wait [#allocation6], 2304  }
  0x38   :  { %468 = vsyncadd [#allocation6], 4294964992  ;;  %v480_v0 = vmov 0.0   ;;  %vm481_vm0 = vmmov 0   ;;  %v344_v1 = vld [vmem:[#allocation5] sm:$0xff]   ;;  %v345_v2 = vld [vmem:[#allocation5 + $0x8] sm:$0xff]   ;;  %v161_v37 = vlaneseq }
  0x39   :  { %307 = vmatprep.subr.bf16.mxu0 %v480_v0  ;;  %311 = vmatprep.mubr.msk.bf16.mxu0 %vm481_vm0, %v480_v0  ;;  %v144_v3 = vld [vmem:[#allocation7 + $0x8] sm:$0xff]  ;;  %v146_v4 = vld [vmem:[#allocation7 + $0x18] sm:$0xff]  ;;  %v143_v5 = vld [vmem:[#allocation7] sm:$0xff]  ;;  %vm96_vm1 = vcmask 261120   ;;  %vm171_vm2 = vcmask 523264  }
  0x3a   :  { %242 = vmatprep.mubr.f32.mxu1 %v480_v0  ;;  %308 = vmatpush3.bf16.msra.mxu0 %v344_v1  ;;  %v315_v6 = vpack.c.bf16 %v146_v4, %v144_v3  ;;  %v145_v7 = vld [vmem:[#allocation7 + $0x10] sm:$0xff]  ;;  %v346_v8 = vld [vmem:[#allocation2] sm:$0xff]   ;;  %v150_v11 = vld [vmem:[#allocation7 + $0x38] sm:$0xff]  ;;  %v162_v38 = vshrl.u32 %v161_v37, 7 }
  0x3b   :  { %309 = vmatprep.subr.bf16.mxu0 %v480_v0  ;;  %v317_v9 = vpack.c.bf16 %v145_v7, %v143_v5  ;;  %v148_v10 = vld [vmem:[#allocation7 + $0x28] sm:$0xff]  ;;  %v147_v13 = vld [vmem:[#allocation7 + $0x20] sm:$0xff]  ;;  %v149_v14 = vld [vmem:[#allocation7 + $0x30] sm:$0xff] }
  0x3c   :  { %316 = vmatprep.subr.bf16.mxu1 %v315_v6  ;;  %v319_v12 = vpack.c.bf16 %v150_v11, %v148_v10  ;;  %v321_v15 = vpack.c.bf16 %v149_v14, %v147_v13  ;;  %v152_v16 = vld [vmem:[#allocation7 + $0x48] sm:$0xff]  ;;  %v154_v17 = vld [vmem:[#allocation7 + $0x58] sm:$0xff]  ;;  %v151_v19 = vld [vmem:[#allocation7 + $0x40] sm:$0xff]  ;;  %v163_v39 = vsub.s32 0, %v162_v38  ;;  %v167_v41 = vsub.s32 1, %v162_v38 }
  0x3d   :  { %318 = vmatpush1.bf16.msra.mxu1 %v317_v9  ;;  %v323_v18 = vpack.c.bf16 %v154_v17, %v152_v16  ;;  %v153_v20 = vld [vmem:[#allocation7 + $0x50] sm:$0xff]  ;;  %v156_v22 = vld [vmem:[#allocation7 + $0x68] sm:$0xff]  ;;  %v158_v23 = vld [vmem:[#allocation7 + $0x78] sm:$0xff] }
  0x3e   :  { %310 = vmatpush3.bf16.msra.mxu0 %v345_v2  ;;  %320 = vmatprep.subr.bf16.mxu1 %v319_v12  ;;  %v325_v21 = vpack.c.bf16 %v153_v20, %v151_v19  ;;  %v155_v24 = vld [vmem:[#allocation7 + $0x60] sm:$0xff]  ;;  %v327_v25 = vpack.c.bf16 %v158_v23, %v156_v22  ;;  %v157_v26 = vld [vmem:[#allocation7 + $0x70] sm:$0xff]  ;;  %v297_v28 = vld [vmem:[%s596_s2] ss:$0 sm:$0xff]  ;;  %s482_s2 = smov [#allocation8]  }
  0x3f   :  { %v329_v27 = vpack.c.bf16 %v157_v26, %v155_v24  ;;  %v159_v40 = vld [vmem:[%s598_s4] sm:$0x3]  ;;  %s268_s14 = sshll.u32 %s482_s2, 4  ;;  %s269_s14 = int_to_ptr.vmem [resolvable:$true] %s268_s14 }
  0x40   :  { %v164_v42 = vrot.slane %v159_v40, %v163_v39  ;;  %v168_v43 = vrot.slane %v159_v40, %v167_v41  ;;  %s421_s4 = scalar_lea.vmem %s269_s14, 256  ;;  %p426_p11 = scmp.lt.s32.totalorder %s269_s14, %s269_s14 }
  0x41   :  { %312 = vmatmul.mubr.msk.bf16.vlgmr.msra.gmra.mrb[0].mxu0 %vm96_vm1, %v346_v8  ;;  %322 = vmatpush1.bf16.msra.mxu1 %v321_v15  ;;  %p422_p10 = scmp.ne.s32.totalorder %s269_s14, %s421_s4  ;;  %p427_p12 = scmp.lt.s32.totalorder %s421_s4, %s421_s4 }
  0x42   :  { %324 = vmatprep.subr.bf16.mxu1 %v323_v18 }
  0x43   :  { %p428_p13 = por %p427_p12, %p426_p11 }
  0x45   :  { %326 = vmatpush1.bf16.msra.mxu1 %v325_v21  ;;  %p429_p0 = pnand %p428_p13, %p422_p10 }
  0x46   :  { %328 = vmatprep.subr.bf16.mxu1 %v327_v25 }
  0x49   :  { %330 = vmatpush1.bf16.msra.mxu1 %v329_v27 }
 0x114   :  { %v134_v29 = vpop.f32.mrb[0].mxu0 }
 0x115   :  { %v135_v30 = vadd.f32 %v297_v28, %v134_v29  ;;  %v313_v31 = vpop.f32.mrb[1].mxu0 }
 0x116   :  { %v137_v32 = vpop.f32.mrb[2].mxu0 }
 0x117   :  { %347 = vtanh.f32 %v135_v30  ;;  %v138_v33 = vadd.f32 %v297_v28, %v137_v32  ;;  %v314_v34 = vpop.f32.mrb[3].mxu0 }
 0x119   :  { %349 = vtanh.f32 %v138_v33 }
 0x121   :  { %v348_v35 = vpop.eup %347 }
 0x122   :  { %302 = vmatmul.mubr.msk.f32.vlgmr.msra.gmra.mrb[0].mxu1 %vm171_vm2, %v348_v35 }
 0x123   :  { %248 = vmatprep.mubr.f32.mxu1 %v480_v0  ;;  %v350_v36 = vpop.eup %349 }
 0x126   :  { %303 = vmatmul.mubr.msk.f32.gmra.mrb[2].mxu1 %vm171_vm2, %v350_v36 }
 0x1f5   :  { %v244_v44 = vpop.f32.mrb[0].mxu1 }
 0x1f6   :  { %v245_v45 = vadd.f32 %v244_v44, %v164_v42  ;;  %v246_v46 = vpop.f32.mrb[1].mxu1 }
 0x1f7   :  { %v247_v47 = vadd.f32 %v246_v46, %v168_v43 }
 0x1f8   :  { %255 = vst [vmem:[#allocation8] sm:$0xff] %v245_v45 }
 0x1f9   :  { %v257_v48 = vmul.f32 1.442695, %v247_v47  ;;  %v250_v49 = vpop.f32.mrb[2].mxu1 }
 0x1fa   :  { %v251_v50 = vadd.f32 %v250_v49, %v164_v42  ;;  %v252_v51 = vpop.f32.mrb[3].mxu1 }
 0x1fb   :  { %351 = vpow2.f32 %v257_v48  ;;  %v253_v52 = vadd.f32 %v252_v51, %v168_v43 }
 0x1fc   :  { %256 = vst [vmem:[#allocation8 + $0x8] sm:$0xff] %v251_v50 }
 0x1fd   :  { %v259_v53 = vmul.f32 1.442695, %v253_v52 }
 0x1fe   :  { %432 = shalt.err (!%p429_p0)
}
 0x1ff   :  { %s433_s17 = scalar_lea.hbm %s599_s5, 256 }
 0x200   :  { %p434_p1 = scmp.ne.s32.totalorder %s599_s5, %s433_s17  ;;  %p437_p2 = scmp.lt.u32.totalorder %s433_s17, %s599_s5 }
 0x202   :  { %p439_p3 = pnand %p437_p2, %p434_p1 }
 0x204   :  { %442 = shalt.err (!%p439_p3)
}
 0x205   :  { %s483_s21 = smov 128   ;;  %s484_s22 = smov 8   ;;  %353 = vpow2.f32 %v259_v53  ;;  %v352_v54 = vpop.eup %351 }
 0x206   :  { %274 = dma.vmem_to_hbm [thread:$0]  %s269_s14, 256, %s599_s5, [#allocation4], %s483_s21, %s483_s21, %s484_s22   ;;  %261 = vst [vmem:[#allocation9] sm:$0xff] %v352_v54 }
 0x207   :  { %s485_s26 = smov [#allocation9]  }
 0x208   :  { %s280_s27 = sshll.u32 %s485_s26, 4  ;;  %s281_s27 = int_to_ptr.vmem [resolvable:$true] %s280_s27 }
 0x209   :  { %s443_s28 = scalar_lea.vmem %s281_s27, 256  ;;  %p448_p5 = scmp.lt.s32.totalorder %s281_s27, %s281_s27 }
 0x20a   :  { %p444_p4 = scmp.ne.s32.totalorder %s281_s27, %s443_s28  ;;  %p449_p6 = scmp.lt.s32.totalorder %s443_s28, %s443_s28 }
 0x20c   :  { %p450_p7 = por %p449_p6, %p448_p5 }
 0x20e   :  { %p451_p8 = pnand %p450_p7, %p444_p4 }
 0x20f   :  { %v354_v55 = vpop.eup %353 }
 0x210   :  { %262 = vst [vmem:[#allocation9 + $0x8] sm:$0xff] %v354_v55 }
 0x211   :  { %454 = shalt.err (!%p451_p8)
}
 0x212   :  { %s455_s7 = scalar_lea.hbm %s600_s6, 256 }
 0x213   :  { %p456_p9 = scmp.ne.s32.totalorder %s600_s6, %s455_s7  ;;  %p459_p10 = scmp.lt.u32.totalorder %s455_s7, %s600_s6 }
 0x215   :  { %p461_p11 = pnand %p459_p10, %p456_p9 }
 0x217   :  { %464 = shalt.err (!%p461_p11)
}
 0x218   :  { %286 = dma.vmem_to_hbm [thread:$0]  %s281_s27, 256, %s600_s6, [#allocation10], %s483_s21, %s483_s21, %s484_s22  }
 0x219   :  { %469 = dma.done.wait [#allocation4], 256  }
 0x21a   :  { %470 = vsyncadd [#allocation4], 4294967040 }
 0x21b   :  { %471 = dma.done.wait [#allocation10], 256  }
 0x21c   :  { %472 = vsyncadd [#allocation10], 4294967040 }
 0x21d   :  { %293 = vsyncpa [#allocation3], 1 }
 0x21e   :  { %294 = vsyncpa [#allocation6], 1 }
 0x21f   :  { %295 = vsyncpa [#allocation4], 1 }
 0x220   :  { %296 = vsyncpa [#allocation10], 1 }

// kernel: tpu_custom_call.1
= control target key start
LH: loop header
LB: loop body
LE: loop exit
PB: predicated region body
PF: predicated region fallthrough
CT: control target
= control target key end

     0   :  { %12 = vsyncpa [#allocation3], 0  ;;  %s594_s0 = inlined_call_operand.hbm [shape: bf16[16,32], index: 0, kind: input, shape index: {}]   ;;  %s595_s1 = inlined_call_operand.hbm [shape: bf16[32,64], index: 1, kind: input, shape index: {}]   ;;  %s596_s2 = inlined_call_operand.vmem [shape: f32[1,64], index: 2, kind: input, shape index: {}]   ;;  %s597_s3 = inlined_call_operand.hbm [shape: f32[64,256], index: 3, kind: input, shape index: {}]   ;;  %s598_s4 = inlined_call_operand.vmem [shape: f32[1,256], index: 4, kind: input, shape index: {}]   ;;  %s599_s5 = inlined_call_operand.hbm [shape: f32[16,128], index: 5, kind: output, shape index: {0}]   ;;  %s600_s6 = inlined_call_operand.hbm [shape: f32[16,128], index: 6, kind: output, shape index: {1}]  }
   0x1   :  { %13 = vsyncpa [#allocation6], 0 }
   0x2   :  { %14 = vsyncpa [#allocation4], 0 }
   0x3   :  { %15 = vsyncpa [#allocation10], 0  ;;  %s473_s21 = smov [#allocation5]   ;;  %s474_s23 = smov [#allocation2]  }
   0x4   :  { %s33_s22 = sshll.u32 %s473_s21, 4  ;;  %s21_s24 = sshll.u32 %s474_s23, 4  ;;  %s34_s22 = int_to_ptr.vmem [resolvable:$true] %s33_s22  ;;  %s521_s24 = int_to_ptr.vmem [resolvable:$true] %s21_s24 }
   0x5   :  { %s355_s27 = scalar_lea.hbm %s595_s1, 256 }
   0x6   :  { %p356_p0 = scmp.ne.s32.totalorder %s595_s1, %s355_s27  ;;  %p359_p1 = scmp.lt.u32.totalorder %s355_s27, %s595_s1 }
   0x8   :  { %p361_p2 = pnand %p359_p1, %p356_p0 }
   0xa   :  { %364 = shalt.err (!%p361_p2)
}
   0xb   :  { %s365_s8 = scalar_lea.vmem %s34_s22, 256  ;;  %p370_p4 = scmp.lt.s32.totalorder %s34_s22, %s34_s22 }
   0xc   :  { %p366_p3 = scmp.ne.s32.totalorder %s34_s22, %s365_s8  ;;  %p371_p5 = scmp.lt.s32.totalorder %s365_s8, %s365_s8 }
   0xe   :  { %p372_p6 = por %p371_p5, %p370_p4 }
  0x10   :  { %p373_p7 = pnand %p372_p6, %p366_p3 }
  0x12   :  { %376 = shalt.err (!%p373_p7)
}
  0x13   :  { %s475_s9 = smov 64   ;;  %s476_s10 = smov 4  }
  0x14   :  { %39 = dma.hbm_to_vmem [thread:$0]  %s595_s1, 256, %s34_s22, [#allocation6], %s475_s9, %s475_s9, %s476_s10  }
  0x15   :  { %s377_s15 = scalar_lea.hbm %s594_s0, 128 }
  0x16   :  { %p378_p8 = scmp.ne.s32.totalorder %s594_s0, %s377_s15  ;;  %p381_p9 = scmp.lt.u32.totalorder %s377_s15, %s594_s0 }
  0x18   :  { %p383_p10 = pnand %p381_p9, %p378_p8 }
  0x1a   :  { %386 = shalt.err (!%p383_p10)
}
  0x1b   :  { %s387_s20 = scalar_lea.vmem %s521_s24, 128  ;;  %p392_p12 = scmp.lt.s32.totalorder %s521_s24, %s521_s24 }
  0x1c   :  { %p388_p11 = scmp.ne.s32.totalorder %s521_s24, %s387_s20  ;;  %p393_p13 = scmp.lt.s32.totalorder %s387_s20, %s387_s20 }
  0x1e   :  { %p394_p0 = por %p393_p13, %p392_p12 }
  0x20   :  { %p395_p1 = pnand %p394_p0, %p388_p11 }
  0x22   :  { %398 = shalt.err (!%p395_p1)
}
  0x23   :  { %27 = dma.hbm_to_vmem [thread:$0]  %s594_s0, 128, %s521_s24, [#allocation3], %s475_s9, %s475_s9, %s476_s10  }
  0x24   :  { %s477_s22 = smov [#allocation7]   ;;  %s399_s27 = scalar_lea.hbm %s597_s3, 2048 }
  0x25   :  { %s47_s23 = sshll.u32 %s477_s22, 4  ;;  %p400_p2 = scmp.ne.s32.totalorder %s597_s3, %s399_s27  ;;  %s48_s23 = int_to_ptr.vmem [resolvable:$true] %s47_s23 }
  0x26   :  { %p403_p3 = scmp.lt.u32.totalorder %s399_s27, %s597_s3 }
  0x28   :  { %p405_p4 = pnand %p403_p3, %p400_p2 }
  0x2a   :  { %408 = shalt.err (!%p405_p4)
}
  0x2b   :  { %s409_s8 = scalar_lea.vmem %s48_s23, 2048  ;;  %p414_p6 = scmp.lt.s32.totalorder %s48_s23, %s48_s23 }
  0x2c   :  { %p410_p5 = scmp.ne.s32.totalorder %s48_s23, %s409_s8  ;;  %p415_p7 = scmp.lt.s32.totalorder %s409_s8, %s409_s8 }
  0x2e   :  { %p416_p8 = por %p415_p7, %p414_p6 }
  0x30   :  { %p417_p9 = pnand %p416_p8, %p410_p5 }
  0x32   :  { %420 = shalt.err (!%p417_p9)
}
  0x33   :  { %s478_s0 = smov 256   ;;  %s479_s24 = smov 16  }
  0x34   :  { %53 = dma.hbm_to_vmem [thread:$0]  %s597_s3, 2048, %s48_s23, [#allocation6], %s478_s0, %s478_s0, %s479_s24  }
  0x35   :  { %465 = dma.done.wait [#allocation3], 128  }
  0x36   :  { %466 = vsyncadd [#allocation3], 4294967168 }
  0x37   :  { %467 = dma.done.wait [#allocation6], 2304  }
  0x38   :  { %468 = vsyncadd [#allocation6], 4294964992  ;;  %v480_v0 = vmov 0.0   ;;  %vm481_vm0 = vmmov 0   ;;  %v344_v1 = vld [vmem:[#allocation5] sm:$0xff]   ;;  %v345_v2 = vld [vmem:[#allocation5 + $0x8] sm:$0xff]   ;;  %v161_v37 = vlaneseq }
  0x39   :  { %307 = vmatprep.subr.bf16.mxu0 %v480_v0  ;;  %311 = vmatprep.mubr.msk.bf16.mxu0 %vm481_vm0, %v480_v0  ;;  %v144_v3 = vld [vmem:[#allocation7 + $0x8] sm:$0xff]  ;;  %v146_v4 = vld [vmem:[#allocation7 + $0x18] sm:$0xff]  ;;  %v143_v5 = vld [vmem:[#allocation7] sm:$0xff]  ;;  %vm96_vm1 = vcmask 261120   ;;  %vm171_vm2 = vcmask 523264  }
  0x3a   :  { %242 = vmatprep.mubr.f32.mxu1 %v480_v0  ;;  %308 = vmatpush3.bf16.msra.mxu0 %v344_v1  ;;  %v315_v6 = vpack.c.bf16 %v146_v4, %v144_v3  ;;  %v145_v7 = vld [vmem:[#allocation7 + $0x10] sm:$0xff]  ;;  %v346_v8 = vld [vmem:[#allocation2] sm:$0xff]   ;;  %v150_v11 = vld [vmem:[#allocation7 + $0x38] sm:$0xff]  ;;  %v162_v38 = vshrl.u32 %v161_v37, 7 }
  0x3b   :  { %309 = vmatprep.subr.bf16.mxu0 %v480_v0  ;;  %v317_v9 = vpack.c.bf16 %v145_v7, %v143_v5  ;;  %v148_v10 = vld [vmem:[#allocation7 + $0x28] sm:$0xff]  ;;  %v147_v13 = vld [vmem:[#allocation7 + $0x20] sm:$0xff]  ;;  %v149_v14 = vld [vmem:[#allocation7 + $0x30] sm:$0xff] }
  0x3c   :  { %316 = vmatprep.subr.bf16.mxu1 %v315_v6  ;;  %v319_v12 = vpack.c.bf16 %v150_v11, %v148_v10  ;;  %v321_v15 = vpack.c.bf16 %v149_v14, %v147_v13  ;;  %v152_v16 = vld [vmem:[#allocation7 + $0x48] sm:$0xff]  ;;  %v154_v17 = vld [vmem:[#allocation7 + $0x58] sm:$0xff]  ;;  %v151_v19 = vld [vmem:[#allocation7 + $0x40] sm:$0xff]  ;;  %v163_v39 = vsub.s32 0, %v162_v38  ;;  %v167_v41 = vsub.s32 1, %v162_v38 }
  0x3d   :  { %318 = vmatpush1.bf16.msra.mxu1 %v317_v9  ;;  %v323_v18 = vpack.c.bf16 %v154_v17, %v152_v16  ;;  %v153_v20 = vld [vmem:[#allocation7 + $0x50] sm:$0xff]  ;;  %v156_v22 = vld [vmem:[#allocation7 + $0x68] sm:$0xff]  ;;  %v158_v23 = vld [vmem:[#allocation7 + $0x78] sm:$0xff] }
  0x3e   :  { %310 = vmatpush3.bf16.msra.mxu0 %v345_v2  ;;  %320 = vmatprep.subr.bf16.mxu1 %v319_v12  ;;  %v325_v21 = vpack.c.bf16 %v153_v20, %v151_v19  ;;  %v155_v24 = vld [vmem:[#allocation7 + $0x60] sm:$0xff]  ;;  %v327_v25 = vpack.c.bf16 %v158_v23, %v156_v22  ;;  %v157_v26 = vld [vmem:[#allocation7 + $0x70] sm:$0xff]  ;;  %v297_v28 = vld [vmem:[%s596_s2] ss:$0 sm:$0xff]  ;;  %s482_s2 = smov [#allocation8]  }
  0x3f   :  { %v329_v27 = vpack.c.bf16 %v157_v26, %v155_v24  ;;  %v159_v40 = vld [vmem:[%s598_s4] sm:$0x3]  ;;  %s268_s14 = sshll.u32 %s482_s2, 4  ;;  %s269_s14 = int_to_ptr.vmem [resolvable:$true] %s268_s14 }
  0x40   :  { %v164_v42 = vrot.slane %v159_v40, %v163_v39  ;;  %v168_v43 = vrot.slane %v159_v40, %v167_v41  ;;  %s421_s4 = scalar_lea.vmem %s269_s14, 256  ;;  %p426_p11 = scmp.lt.s32.totalorder %s269_s14, %s269_s14 }
  0x41   :  { %312 = vmatmul.mubr.msk.bf16.vlgmr.msra.gmra.mrb[0].mxu0 %vm96_vm1, %v346_v8  ;;  %322 = vmatpush1.bf16.msra.mxu1 %v321_v15  ;;  %p422_p10 = scmp.ne.s32.totalorder %s269_s14, %s421_s4  ;;  %p427_p12 = scmp.lt.s32.totalorder %s421_s4, %s421_s4 }
  0x42   :  { %324 = vmatprep.subr.bf16.mxu1 %v323_v18 }
  0x43   :  { %p428_p13 = por %p427_p12, %p426_p11 }
  0x45   :  { %326 = vmatpush1.bf16.msra.mxu1 %v325_v21  ;;  %p429_p0 = pnand %p428_p13, %p422_p10 }
  0x46   :  { %328 = vmatprep.subr.bf16.mxu1 %v327_v25 }
  0x49   :  { %330 = vmatpush1.bf16.msra.mxu1 %v329_v27 }
 0x114   :  { %v134_v29 = vpop.f32.mrb[0].mxu0 }
 0x115   :  { %v135_v30 = vadd.f32 %v297_v28, %v134_v29  ;;  %v313_v31 = vpop.f32.mrb[1].mxu0 }
 0x116   :  { %v137_v32 = vpop.f32.mrb[2].mxu0 }
 0x117   :  { %347 = vtanh.f32 %v135_v30  ;;  %v138_v33 = vadd.f32 %v297_v28, %v137_v32  ;;  %v314_v34 = vpop.f32.mrb[3].mxu0 }
 0x119   :  { %349 = vtanh.f32 %v138_v33 }
 0x121   :  { %v348_v35 = vpop.eup %347 }
 0x122   :  { %302 = vmatmul.mubr.msk.f32.vlgmr.msra.gmra.mrb[0].mxu1 %vm171_vm2, %v348_v35 }
 0x123   :  { %248 = vmatprep.mubr.f32.mxu1 %v480_v0  ;;  %v350_v36 = vpop.eup %349 }
 0x126   :  { %303 = vmatmul.mubr.msk.f32.gmra.mrb[2].mxu1 %vm171_vm2, %v350_v36 }
 0x1f5   :  { %v244_v44 = vpop.f32.mrb[0].mxu1 }
 0x1f6   :  { %v245_v45 = vadd.f32 %v244_v44, %v164_v42  ;;  %v246_v46 = vpop.f32.mrb[1].mxu1 }
 0x1f7   :  { %v247_v47 = vadd.f32 %v246_v46, %v168_v43 }
 0x1f8   :  { %255 = vst [vmem:[#allocation8] sm:$0xff] %v245_v45 }
 0x1f9   :  { %v257_v48 = vmul.f32 1.442695, %v247_v47  ;;  %v250_v49 = vpop.f32.mrb[2].mxu1 }
 0x1fa   :  { %v251_v50 = vadd.f32 %v250_v49, %v164_v42  ;;  %v252_v51 = vpop.f32.mrb[3].mxu1 }
 0x1fb   :  { %351 = vpow2.f32 %v257_v48  ;;  %v253_v52 = vadd.f32 %v252_v51, %v168_v43 }
 0x1fc   :  { %256 = vst [vmem:[#allocation8 + $0x8] sm:$0xff] %v251_v50 }
 0x1fd   :  { %v259_v53 = vmul.f32 1.442695, %v253_v52 }
 0x1fe   :  { %432 = shalt.err (!%p429_p0)
}
 0x1ff   :  { %s433_s17 = scalar_lea.hbm %s599_s5, 256 }
 0x200   :  { %p434_p1 = scmp.ne.s32.totalorder %s599_s5, %s433_s17  ;;  %p437_p2 = scmp.lt.u32.totalorder %s433_s17, %s599_s5 }
 0x202   :  { %p439_p3 = pnand %p437_p2, %p434_p1 }
 0x204   :  { %442 = shalt.err (!%p439_p3)
}
 0x205   :  { %s483_s21 = smov 128   ;;  %s484_s22 = smov 8   ;;  %353 = vpow2.f32 %v259_v53  ;;  %v352_v54 = vpop.eup %351 }
 0x206   :  { %274 = dma.vmem_to_hbm [thread:$0]  %s269_s14, 256, %s599_s5, [#allocation4], %s483_s21, %s483_s21, %s484_s22   ;;  %261 = vst [vmem:[#allocation9] sm:$0xff] %v352_v54 }
 0x207   :  { %s485_s26 = smov [#allocation9]  }
 0x208   :  { %s280_s27 = sshll.u32 %s485_s26, 4  ;;  %s281_s27 = int_to_ptr.vmem [resolvable:$true] %s280_s27 }
 0x209   :  { %s443_s28 = scalar_lea.vmem %s281_s27, 256  ;;  %p448_p5 = scmp.lt.s32.totalorder %s281_s27, %s281_s27 }
 0x20a   :  { %p444_p4 = scmp.ne.s32.totalorder %s281_s27, %s443_s28  ;;  %p449_p6 = scmp.lt.s32.totalorder %s443_s28, %s443_s28 }
 0x20c   :  { %p450_p7 = por %p449_p6, %p448_p5 }
 0x20e   :  { %p451_p8 = pnand %p450_p7, %p444_p4 }
 0x20f   :  { %v354_v55 = vpop.eup %353 }
 0x210   :  { %262 = vst [vmem:[#allocation9 + $0x8] sm:$0xff] %v354_v55 }
 0x211   :  { %454 = shalt.err (!%p451_p8)
}
 0x212   :  { %s455_s7 = scalar_lea.hbm %s600_s6, 256 }
 0x213   :  { %p456_p9 = scmp.ne.s32.totalorder %s600_s6, %s455_s7  ;;  %p459_p10 = scmp.lt.u32.totalorder %s455_s7, %s600_s6 }
 0x215   :  { %p461_p11 = pnand %p459_p10, %p456_p9 }
 0x217   :  { %464 = shalt.err (!%p461_p11)
}
 0x218   :  { %286 = dma.vmem_to_hbm [thread:$0]  %s281_s27, 256, %s600_s6, [#allocation10], %s483_s21, %s483_s21, %s484_s22  }
 0x219   :  { %469 = dma.done.wait [#allocation4], 256  }
 0x21a   :  { %470 = vsyncadd [#allocation4], 4294967040 }
 0x21b   :  { %471 = dma.done.wait [#allocation10], 256  }
 0x21c   :  { %472 = vsyncadd [#allocation10], 4294967040 }
 0x21d   :  { %293 = vsyncpa [#allocation3], 1 }
 0x21e   :  { %294 = vsyncpa [#allocation6], 1 }
 0x21f   :  { %295 = vsyncpa [#allocation4], 1 }
 0x220   :  { %296 = vsyncpa [#allocation10], 1 }

</bundles_post_ra>
